<compile_context>
chip_gen: v6e
topology: v6e:2x2x1
jax: 0.10.0
libtpu: 0.0.40
codegen_flags: <defaults>
</compile_context>

<pallas_src>
import functools

import jax
import jax.numpy as jnp
from jax.experimental import pallas as pl
from jax.experimental.pallas import tpu as pltpu


def _round_up(x, m):
    return (x + m - 1) // m * m


def _largest_aligned_divisor(total, target, align):
    """Largest multiple of `align` that divides `total` and is <= max(target, align).

    Requires total % align == 0 (holds: total is a padded 128-multiple)."""
    t = min(total, max(align, (target // align) * align))
    while total % t:
        t -= align
    return t


def _weight_block_spec(tk, tn, buffer_count):
    index_map = lambda i, j, k: (k, j)
    if buffer_count > 2:
        try:
            return pl.BlockSpec((tk, tn), index_map,
                                pipeline_mode=pl.Buffered(buffer_count))
        except TypeError:
            # Older Pallas without pipeline_mode: fall back to default 2 buffers.
            pass
    return pl.BlockSpec((tk, tn), index_map)


def _linear_decoder_kernel(x_ref, w_ref, b_ref, o_ref, acc_ref):
    """One (tm, tn) output tile; grid axis 2 iterates over K chunks."""
    k = pl.program_id(2)

    @pl.when(k == 0)
    def _init():
        # Fold the bias into the accumulator init (f32, broadcast over rows).
        acc_ref[...] = jnp.broadcast_to(
            b_ref[...].astype(jnp.float32), acc_ref.shape)

    # MXU matmul, f32 accumulation regardless of input dtype.
    acc_ref[...] += jnp.dot(
        x_ref[...], w_ref[...], preferred_element_type=jnp.float32)

    @pl.when(k == pl.num_programs(2) - 1)
    def _finalize():
        o_ref[...] = acc_ref[...].astype(o_ref.dtype)


def prepare_linear_decoder_params(w_t, b, compute_dtype=jnp.bfloat16):
    """One-time weight/bias preprocessing (call at model-build time, NOT per step).

    w_t : (H, O)  transposed PyTorch nn.Linear weight
    b   : (O,) or (1, O)
    Returns (w_prepared, b_prepared): bf16 weight padded to 128-multiples,
    f32 bias padded to the same O.  Padded columns/rows are zero, so the
    kernel output over the padded region is exactly zero + sliced away.
    TODO(synk): on v7x an fp8 weight path (with scale handling) would halve
    weight HBM traffic again; not implemented here.
    """
    H, O = w_t.shape
    Kp, Np = _round_up(H, 128), _round_up(O, 128)
    w_p = w_t.astype(compute_dtype)
    if (Kp, Np) != (H, O):
        w_p = jnp.pad(w_p, ((0, Kp - H), (0, Np - O)))
    b_p = jnp.asarray(b).reshape(1, O).astype(jnp.float32)
    if Np != O:
        b_p = jnp.pad(b_p, ((0, 0), (0, Np - O)))
    return w_p, b_p


@functools.partial(
    jax.jit,
    static_argnames=("output_size", "tm_cap", "tn_cap", "tk_cap",
                     "out_dtype", "vmem_limit_bytes"),
)
def linear_decoder_forward(
    x,
    w_prepared,
    b_prepared,
    *,
    output_size,
    tm_cap=512,
    tn_cap=512,
    tk_cap=512,
    out_dtype=None,
    vmem_limit_bytes=None,
):
    """logits = x @ W.T + b   with W pre-prepared by prepare_linear_decoder_params.

    x          : (B, H)
    w_prepared : (Kp, Np)  bf16, 128-aligned, zero-padded
    b_prepared : (1, Np)   f32, zero-padded
    """
    B, H = x.shape
    Kp, Np = w_prepared.shape
    assert Kp % 128 == 0 and Np % 128 == 0 and Kp >= H and Np >= output_size
    out_dtype = x.dtype if out_dtype is None else out_dtype
    compute_dtype = w_prepared.dtype

    # --- tile selection (all static under jit) ---------------------------------
    # Maximize tm so the weight is streamed from HBM as few times as possible.
    if B <= tm_cap:
        tm = _round_up(B, 8)
        Mp = tm
    else:
        tm = _round_up(tm_cap, 8)
        Mp = _round_up(B, tm)
    tk = _largest_aligned_divisor(Kp, tk_cap, 128)
    tn = _largest_aligned_divisor(Np, tn_cap, 128)
    # v7x 2-TC rule: if the M axis has a single tile, keep >= 2 tiles along N
    # so both TensorCores get work under the "parallel" semantics.
    if Mp // tm == 1 and Np // tn < 2 and Np >= 256:
        tn = _largest_aligned_divisor(Np, Np // 2, 128)

    grid = (Mp // tm, Np // tn, Kp // tk)
    total_steps = grid[0] * grid[1] * grid[2]
    # Decode regime: per-tile MXU work is trivial -> deeper weight pipeline.
    weight_buffers = 3 if (tm <= 64 and total_steps >= 3) else 2

    # --- conditional activation pad (x is the small tensor; cast is cheap) -----
    x_c = x.astype(compute_dtype)
    if (Mp, Kp) != (B, H):
        x_c = jnp.pad(x_c, ((0, Mp - B), (0, Kp - H)))

    cost = pl.CostEstimate(
        flops=2 * Mp * Kp * Np,
        transcendentals=0,
        bytes_accessed=(
            Kp * Np * w_prepared.dtype.itemsize * (Mp // tm)      # weight streams
            + Mp * Kp * x_c.dtype.itemsize * (Np // tn)           # activations
            + Np * 4 * (Mp // tm)                                  # bias
            + Mp * Np * jnp.dtype(out_dtype).itemsize),            # logits write
    )

    out_padded = pl.pallas_call(
        _linear_decoder_kernel,
        out_shape=jax.ShapeDtypeStruct((Mp, Np), out_dtype),
        grid_spec=pltpu.PrefetchScalarGridSpec(
            num_scalar_prefetch=0,
            grid=grid,
            in_specs=[
                pl.BlockSpec((tm, tk), lambda i, j, k: (i, k)),   # activations
                _weight_block_spec(tk, tn, weight_buffers),        # weights
                pl.BlockSpec((1, tn), lambda i, j, k: (0, j)),     # bias, K-resident
            ],
            out_specs=pl.BlockSpec((tm, tn), lambda i, j, k: (i, j)),
            scratch_shapes=[pltpu.VMEM((tm, tn), jnp.float32)],
        ),
        compiler_params=pltpu.CompilerParams(
            dimension_semantics=("parallel", "parallel", "arbitrary"),
            vmem_limit_bytes=vmem_limit_bytes,
        ),
        cost_estimate=cost,
    )(x_c, w_prepared, b_prepared)

    # Slice only when padding was actually applied (avoids an extra HBM pass).
    if (Mp, Np) != (B, output_size):
        return out_padded[:B, :output_size]
    return out_padded


def _reference_forward(x, w_t, b, compute_dtype=jnp.bfloat16):
    # Matches kernel numerics: bf16-rounded inputs, f32 accumulate, f32 bias.
    xr = x.astype(compute_dtype).astype(jnp.float32)
    wr = w_t.astype(compute_dtype).astype(jnp.float32)
    return xr @ wr + jnp.asarray(b).reshape(1, -1).astype(jnp.float32)


if __name__ == "__main__":
    key = jax.random.PRNGKey(0)

    # --- 1) small shapes consistent with LinearDecoder(hidden_size=32, output_size=4)
    batch, hidden_size, output_size = 8, 32, 4
    kx, kw, kb, key = jax.random.split(key, 4)
    bound = 1.0 / (hidden_size ** 0.5)
    w_t = jax.random.uniform(kw, (hidden_size, output_size), jnp.float32, -bound, bound)
    b = jax.random.uniform(kb, (output_size,), jnp.float32, -bound, bound)
    x = jax.random.normal(kx, (batch, hidden_size), jnp.float32)

    w_p, b_p = prepare_linear_decoder_params(w_t, b)
    logits = jax.block_until_ready(
        linear_decoder_forward(x, w_p, b_p, output_size=output_size))
    ref = _reference_forward(x, w_t, b)
    assert logits.shape == (batch, output_size)
    assert jnp.allclose(logits, ref, atol=1e-2, rtol=1e-2), "small-shape mismatch"

    # --- 2) decode-like: tiny batch, unaligned H/O -> padding, (1,3,2) grid,
    #        deeper weight pipeline, post-slice path.
    B2, H2, O2 = 4, 1000, 300
    kx2, kw2, kb2, key = jax.random.split(key, 4)
    bound2 = 1.0 / (H2 ** 0.5)
    w2 = jax.random.uniform(kw2, (H2, O2), jnp.float32, -bound2, bound2)
    b2 = jax.random.uniform(kb2, (O2,), jnp.float32, -bound2, bound2)
    x2 = jax.random.normal(kx2, (B2, H2), jnp.float32)

    w2_p, b2_p = prepare_linear_decoder_params(w2, b2)
    logits2 = jax.block_until_ready(
        linear_decoder_forward(x2, w2_p, b2_p, output_size=O2))
    ref2 = _reference_forward(x2, w2, b2)
    assert logits2.shape == (B2, O2)
    assert jnp.allclose(logits2, ref2, atol=2e-2, rtol=2e-2), "decode-shape mismatch"

    # --- 3) aligned batch shapes: no padding, no slice, big tm tile, 2-TC N split.
    B3, H3, O3 = 256, 512, 384
    kx3, kw3, kb3, key = jax.random.split(key, 4)
    bound3 = 1.0 / (H3 ** 0.5)
    w3 = jax.random.uniform(kw3, (H3, O3), jnp.float32, -bound3, bound3)
    b3 = jax.random.uniform(kb3, (O3,), jnp.float32, -bound3, bound3)
    x3 = jax.random.normal(kx3, (B3, H3), jnp.float32)

    w3_p, b3_p = prepare_linear_decoder_params(w3, b3)
    logits3 = jax.block_until_ready(
        linear_decoder_forward(x3, w3_p, b3_p, output_size=O3))
    ref3 = _reference_forward(x3, w3, b3)
    assert logits3.shape == (B3, O3)
    assert jnp.allclose(logits3, ref3, atol=2e-2, rtol=2e-2), "batch-shape mismatch"

    # TODO(synk): predict()/compute_loss() (sigmoid/softmax, argmax, BCE/CE) are
    # post-forward utilities and are intentionally not implemented in-kernel.
    print("KERNEL_OK")
</pallas_src>

<mosaic_0001>
module attributes {stable_mosaic.version = 11 : i64} {
  func.func @_linear_decoder_kernel(%arg0: i32, %arg1: i32, %arg2: i32, %arg3: memref<8x128xbf16, #tpu.memory_space<vmem>>, %arg4: memref<128x128xbf16, #tpu.memory_space<vmem>>, %arg5: memref<1x128xf32, #tpu.memory_space<vmem>>, %arg6: memref<8x128xf32, #tpu.memory_space<vmem>>, %arg7: memref<8x128xf32, #tpu.memory_space<vmem>>) attributes {dimension_semantics = [#tpu.dimension_semantics<parallel>, #tpu.dimension_semantics<parallel>, #tpu.dimension_semantics<arbitrary>], iteration_bounds = array<i64: 1, 1, 1>, scalar_prefetch = 0 : i64, scratch_operands = 1 : i64, tpu.core_type = #tpu.core_type<tc>, window_params = [{transform_indices = @transform_0, window_bounds = array<i64: 8, 128>}, {transform_indices = @transform_1, window_bounds = array<i64: 128, 128>}, {transform_indices = @transform_2, window_bounds = array<i64: 1, 128>}, {transform_indices = @transform_3, window_bounds = array<i64: 8, 128>}]} {
    %c0_i32 = arith.constant 0 : i32
    %0 = arith.cmpi eq, %arg2, %c0_i32 : i32
    %1 = arith.extui %0 : i1 to i32
    %c0_i32_0 = arith.constant 0 : i32
    %2 = arith.cmpi ne, %1, %c0_i32_0 : i32
    scf.if %2 {
      %c0_10 = arith.constant 0 : index
      %c0_11 = arith.constant 0 : index
      %12 = vector.load %arg5[%c0_10, %c0_11] : memref<1x128xf32, #tpu.memory_space<vmem>>, vector<1x128xf32>
      %13 = vector.shape_cast %12 : vector<1x128xf32> to vector<1x128xf32>
      %14 = vector.broadcast %13 : vector<1x128xf32> to vector<8x128xf32>
      %c0_12 = arith.constant 0 : index
      %c0_13 = arith.constant 0 : index
      %15 = vector.load %arg7[%c0_12, %c0_13] : memref<8x128xf32, #tpu.memory_space<vmem>>, vector<8x128xf32>
      tpu.vector_store %arg7[%c0_12, %c0_13], %14 {strides = array<i32>} : memref<8x128xf32, #tpu.memory_space<vmem>>, vector<8x128xf32>,
    } else {
    }
    %c0 = arith.constant 0 : index
    %c0_1 = arith.constant 0 : index
    %3 = vector.load %arg7[%c0, %c0_1] : memref<8x128xf32, #tpu.memory_space<vmem>>, vector<8x128xf32>
    %c0_2 = arith.constant 0 : index
    %c0_3 = arith.constant 0 : index
    %4 = vector.load %arg3[%c0_2, %c0_3] : memref<8x128xbf16, #tpu.memory_space<vmem>>, vector<8x128xbf16>
    %c0_4 = arith.constant 0 : index
    %c0_5 = arith.constant 0 : index
    %5 = vector.load %arg4[%c0_4, %c0_5] : memref<128x128xbf16, #tpu.memory_space<vmem>>, vector<128x128xbf16>
    %cst = arith.constant dense<0.000000e+00> : vector<8x128xf32>
    %6 = tpu.matmul %4, %5, %cst {dimension_numbers = #tpu.dot_dimension_numbers<[1], [0], [0], [1], [0, 0, 1, 1], [], []>} : vector<8x128xbf16>, vector<128x128xbf16>, vector<8x128xf32> -> vector<8x128xf32>
    %7 = arith.addf %3, %6 : vector<8x128xf32>
    %c0_6 = arith.constant 0 : index
    %c0_7 = arith.constant 0 : index
    %8 = vector.load %arg7[%c0_6, %c0_7] : memref<8x128xf32, #tpu.memory_space<vmem>>, vector<8x128xf32>
    tpu.vector_store %arg7[%c0_6, %c0_7], %7 {strides = array<i32>} : memref<8x128xf32, #tpu.memory_space<vmem>>, vector<8x128xf32>,
    %c0_i32_8 = arith.constant 0 : i32
    %9 = arith.cmpi eq, %arg2, %c0_i32_8 : i32
    %10 = arith.extui %9 : i1 to i32
    %c0_i32_9 = arith.constant 0 : i32
    %11 = arith.cmpi ne, %10, %c0_i32_9 : i32
    scf.if %11 {
      %c0_10 = arith.constant 0 : index
      %c0_11 = arith.constant 0 : index
      %12 = vector.load %arg7[%c0_10, %c0_11] : memref<8x128xf32, #tpu.memory_space<vmem>>, vector<8x128xf32>
      %c0_12 = arith.constant 0 : index
      %c0_13 = arith.constant 0 : index
      %13 = vector.load %arg6[%c0_12, %c0_13] : memref<8x128xf32, #tpu.memory_space<vmem>>, vector<8x128xf32>
      tpu.vector_store %arg6[%c0_12, %c0_13], %12 {strides = array<i32>} : memref<8x128xf32, #tpu.memory_space<vmem>>, vector<8x128xf32>,
    } else {
    }
    return
  }
  func.func @transform_0(%arg0: i32, %arg1: i32, %arg2: i32) -> (i32, i32) {
    %c0_i32 = arith.constant 0 : i32
    return %arg0, %arg2 : i32, i32
  }
  func.func @transform_1(%arg0: i32, %arg1: i32, %arg2: i32) -> (i32, i32) {
    %c0_i32 = arith.constant 0 : i32
    return %arg2, %arg1 : i32, i32
  }
  func.func @transform_2(%arg0: i32, %arg1: i32, %arg2: i32) -> (i32, i32) {
    %c0_i32 = arith.constant 0 : i32
    %c0_i32_0 = arith.constant 0 : i32
    return %c0_i32, %arg1 : i32, i32
  }
  func.func @transform_3(%arg0: i32, %arg1: i32, %arg2: i32) -> (i32, i32) {
    %c0_i32 = arith.constant 0 : i32
    return %arg0, %arg1 : i32, i32
  }
}

</mosaic_0001>

<bundles_post_ra>
// kernel: linear_decoder_forward.1
= control target key start
LH: loop header
LB: loop body
LE: loop exit
PB: predicated region body
PF: predicated region fallthrough
CT: control target
= control target key end

     0   :  { %8 = vsyncpa [#allocation4], 0  ;;  %s232_s12 = smov [#allocation3]   ;;  %s269_s0 = inlined_call_operand.vmem [shape: bf16[8,128], index: 0, kind: input, shape index: {}]   ;;  %s270_s1 = inlined_call_operand.hbm [shape: bf16[128,128], index: 1, kind: input, shape index: {}]   ;;  %s271_s2 = inlined_call_operand.vmem [shape: f32[1,128], index: 2, kind: input, shape index: {}]   ;;  %s272_s3 = inlined_call_operand.vmem [shape: f32[8,128], index: 3, kind: output, shape index: {}]  }
   0x1   :  { %s16_s13 = sshll.u32 %s232_s12, 4  ;;  %s17_s13 = int_to_ptr.vmem [resolvable:$true] %s16_s13 }
   0x2   :  { %s218_s14 = scalar_lea.vmem %s17_s13, 1024  ;;  %p223_p1 = scmp.lt.s32.totalorder %s17_s13, %s17_s13 }
   0x3   :  { %p219_p0 = scmp.ne.s32.totalorder %s17_s13, %s218_s14  ;;  %p224_p2 = scmp.lt.s32.totalorder %s218_s14, %s218_s14 }
   0x5   :  { %p225_p3 = por %p224_p2, %p223_p1 }
   0x7   :  { %p226_p4 = pnand %p225_p3, %p219_p0 }
   0x9   :  { %229 = shalt.err (!%p226_p4)
}
   0xa   :  { %s233_s15 = smov 64   ;;  %s234_s16 = smov 4  }
   0xb   :  { %22 = dma.hbm_to_vmem [thread:$0]  %s270_s1, 1024, %s17_s13, [#allocation4], %s233_s15, %s233_s15, %s234_s16  }
   0xc   :  { %230 = dma.done.wait [#allocation4], 1024  }
   0xd   :  { %231 = vsyncadd [#allocation4], 4294966272  ;;  %v235_v0 = vmov 0.0   ;;  %vm236_vm0 = vmmov 0   ;;  %v202_v1 = vld [vmem:[#allocation3 + $0x38] sm:$0xff]   ;;  %v203_v2 = vld [vmem:[#allocation3 + $0x30] sm:$0xff]  }
   0xe   :  { %177 = vmatprep.subr.bf16.mxu0 %v235_v0  ;;  %193 = vmatprep.mubr.msk.bf16.mxu0 %vm236_vm0, %v235_v0  ;;  %v204_v3 = vld [vmem:[#allocation3 + $0x28] sm:$0xff]   ;;  %v205_v4 = vld [vmem:[#allocation3 + $0x20] sm:$0xff]   ;;  %v206_v5 = vld [vmem:[#allocation3 + $0x18] sm:$0xff]  }
   0xf   :  { %178 = vmatpush3.bf16.msra.mxu0 %v202_v1  ;;  %v207_v6 = vld [vmem:[#allocation3 + $0x10] sm:$0xff]   ;;  %v208_v7 = vld [vmem:[#allocation3 + $0x8] sm:$0xff]   ;;  %v209_v8 = vld [vmem:[#allocation3] sm:$0xff]  }
  0x10   :  { %179 = vmatprep.subr.bf16.mxu0 %v235_v0  ;;  %v42_v9 = vld [vmem:[%s269_s0] sm:$0xf] }
  0x11   :  { %v159_v10 = vld [vmem:[%s271_s2] ss:$0 sm:$0xff] }
  0x13   :  { %180 = vmatpush3.bf16.msra.mxu0 %v203_v2 }
  0x14   :  { %181 = vmatprep.subr.bf16.mxu0 %v235_v0 }
  0x17   :  { %182 = vmatpush3.bf16.msra.mxu0 %v204_v3 }
  0x18   :  { %183 = vmatprep.subr.bf16.mxu0 %v235_v0 }
  0x1b   :  { %184 = vmatpush3.bf16.msra.mxu0 %v205_v4 }
  0x1c   :  { %185 = vmatprep.subr.bf16.mxu0 %v235_v0 }
  0x1f   :  { %186 = vmatpush3.bf16.msra.mxu0 %v206_v5 }
  0x20   :  { %187 = vmatprep.subr.bf16.mxu0 %v235_v0 }
  0x23   :  { %188 = vmatpush3.bf16.msra.mxu0 %v207_v6 }
  0x24   :  { %189 = vmatprep.subr.bf16.mxu0 %v235_v0 }
  0x27   :  { %190 = vmatpush3.bf16.msra.mxu0 %v208_v7 }
  0x28   :  { %191 = vmatprep.subr.bf16.mxu0 %v235_v0 }
  0x2b   :  { %192 = vmatpush3.bf16.msra.mxu0 %v209_v8 }
  0x2e   :  { %194 = vmatmul.mubr.bf16.vlgmr.msra.gmra.mxu0 %v42_v9 }
  0xee   :  { %v141_v11 = vpop.f32.mrf.mxu0 }
  0xef   :  { %v147_v12 = vadd.f32 %v159_v10, %v141_v11 }
  0xf0   :  { %v195_v13 = vpop.f32.mrf.mxu0 }
  0xf1   :  { %153 = vst [vmem:[%s272_s3] sm:$0xff] %v147_v12 }
  0xf2   :  { %v144_v14 = vpop.f32.mrf.mxu0 }
  0xf4   :  { %v196_v15 = vpop.f32.mrf.mxu0 }
  0xf5   :  { %158 = vsyncpa [#allocation4], 1 }

</bundles_post_ra>
